<compile_context>
chip_gen: v7x
topology: tpu7x:2x2x1
jax: 0.10.0
libtpu: 0.0.40
codegen_flags: <defaults>
</compile_context>

<pallas_src>
import jax
import jax.numpy as jnp
from jax.experimental import pallas as pl
from jax.experimental.pallas import tpu as pltpu


def _complex_mult_kernel(x_ref, w_ref, bre_ref, bim_ref, o_ref):
    # x_ref  : (1, K*I, Nt)   activations, re/im interleaved on the lane axis
    # w_ref  : (2*K*O, K*I)   [blockdiag(Wr); blockdiag(Wi)]  (grid-resident)
    # bre_ref: (K*O, 1)       real bias
    # bim_ref: (K*O, 1)       imag bias
    # o_ref  : (1, K*O, Nt)   output, re/im interleaved on the lane axis
    KO = o_ref.shape[1]
    Nt = o_ref.shape[2]

    a = x_ref[0]                                                    # (K*I, Nt)
    # One fused MXU matmul: [Wr@a ; Wi@a]
    prod = jnp.dot(w_ref[...], a, preferred_element_type=jnp.float32)
    re_acc = prod[:KO]                                              # Wr @ a
    im_acc = prod[KO:]                                              # Wi @ a

    # Complex recombination, fully in-register (XLU rolls + VPU select):
    #   out[:, 2h]   = re_acc[:, 2h]   - im_acc[:, 2h+1] + b_re
    #   out[:, 2h+1] = re_acc[:, 2h+1] + im_acc[:, 2h]   + b_im
    lane = jax.lax.broadcasted_iota(jnp.int32, (KO, Nt), 1)
    even = (lane & 1) == 0
    im_swz = jnp.where(
        even,
        -pltpu.roll(im_acc, shift=Nt - 1, axis=1),   # lane 2h   <- -im_acc[2h+1]
        pltpu.roll(im_acc, shift=1, axis=1),         # lane 2h+1 <-  im_acc[2h]
    )
    bias = jnp.where(even, bre_ref[...], bim_ref[...])              # lane-broadcast
    o_ref[0] = re_acc + im_swz + bias


def prepare_complex_mult_params(weight, bias):
    """Hoisted once-per-parameter-update fusion of the complex weight/bias.

    weight : (K, I, O, 2) float32
    bias   : (K, O, 1, 1, 2) float32
    returns: w_full (2*K*O, K*I), b_re (K*O, 1), b_im (K*O, 1)
    """
    K, I, O, _ = weight.shape
    wr_t = jnp.transpose(weight[..., 0], (0, 2, 1))    # (K, O, I)
    wi_t = jnp.transpose(weight[..., 1], (0, 2, 1))    # (K, O, I)
    eye = jnp.eye(K, dtype=weight.dtype)
    # block-diagonal (K*O, K*I): entry [(k,o),(l,i)] = w[k,o,i] * delta_{kl}
    wr_bd = (wr_t[:, :, None, :] * eye[:, None, :, None]).reshape(K * O, K * I)
    wi_bd = (wi_t[:, :, None, :] * eye[:, None, :, None]).reshape(K * O, K * I)
    w_full = jnp.concatenate([wr_bd, wi_bd], axis=0)   # (2*K*O, K*I)
    b_re = bias[..., 0].reshape(K * O, 1)
    b_im = bias[..., 1].reshape(K * O, 1)
    return w_full, b_re, b_im


def _pick_n_tile(n2, target=8192):
    """Lane tile: whole axis if small, else the largest multiple-of-256 divisor
    <= target (keeps re/im pairs intact, (8,128)-aligned, v7x-VMEM-safe)."""
    if n2 <= target:
        return n2
    t = target - (target % 256)
    while t >= 256:
        if n2 % t == 0:
            return t
        t -= 256
    return n2


def complex_mult_add(inp, w_full, b_re, b_im):
    """Pallas implementation of compl_mul_add_fwd_c (forward only).

    inp    : (B, K, I, H, W, 2) float32  (PyTorch layout, consumed in place)
    w_full : (2*K*O, K*I)       from prepare_complex_mult_params
    b_re   : (K*O, 1)
    b_im   : (K*O, 1)
    returns: (B, K, O, H, W, 2) float32
    """
    B, K, I, H, W, _ = inp.shape
    KO = b_re.shape[0]
    O = KO // K
    N2 = H * W * 2                     # interleaved spatial*complex lane axis

    x = inp.reshape(B, K * I, N2)      # free reshape: merges contiguous dims only

    n_tile = _pick_n_tile(N2)
    n_tiles = N2 // n_tile

    out = pl.pallas_call(
        _complex_mult_kernel,
        out_shape=jax.ShapeDtypeStruct((B, KO, N2), jnp.float32),
        grid_spec=pltpu.PrefetchScalarGridSpec(
            num_scalar_prefetch=0,
            # innermost = lane tiles; weight/bias index_maps ignore it so the
            # fused weight + bias stay VMEM-resident across all steps.
            grid=(B, n_tiles),
            in_specs=[
                pl.BlockSpec((1, K * I, n_tile), lambda b, n: (b, 0, n)),   # activations
                pl.BlockSpec((2 * KO, K * I), lambda b, n: (0, 0)),         # fused weight
                pl.BlockSpec((KO, 1), lambda b, n: (0, 0)),                 # real bias
                pl.BlockSpec((KO, 1), lambda b, n: (0, 0)),                 # imag bias
            ],
            out_specs=pl.BlockSpec((1, KO, n_tile), lambda b, n: (b, 0, n)),
        ),
        compiler_params=pltpu.CompilerParams(
            dimension_semantics=("parallel", "parallel")),
    )(x, w_full, b_re, b_im)

    return out.reshape(B, K, O, H, W, 2)   # free reshape: splits contiguous dims


def _reference(inp, weight, bias):
    ac = inp[..., 0] + 1j * inp[..., 1]                  # (B,K,I,H,W)
    wc = weight[..., 0] + 1j * weight[..., 1]            # (K,I,O)
    bc = bias[..., 0] + 1j * bias[..., 1]                # (K,O,1,1)
    tmp = jnp.einsum("bkixy,kio->bkoxy", ac, wc) + bc
    return jnp.stack([tmp.real, tmp.imag], axis=-1)


if __name__ == "__main__":
    # Module hyper-params (small): num_blocks=4, block_size=8, hidden_size_factor=2
    num_blocks = 4
    block_size = 8
    hidden_size_factor = 2
    B, H, W = 2, 16, 16
    O = block_size * hidden_size_factor

    key = jax.random.PRNGKey(0)
    k_inp, k_w, k_b = jax.random.split(key, 3)

    # The module initializes weight=ones, bias=zeros; add small deterministic
    # perturbations so the correctness check is non-trivial.
    weight = jnp.ones((num_blocks, block_size, O, 2), jnp.float32) \
        + 0.1 * jax.random.normal(k_w, (num_blocks, block_size, O, 2), jnp.float32)
    bias = jnp.zeros((num_blocks, O, 1, 1, 2), jnp.float32) \
        + 0.1 * jax.random.normal(k_b, (num_blocks, O, 1, 1, 2), jnp.float32)

    inp = jax.random.normal(k_inp, (B, num_blocks, block_size, H, W, 2), jnp.float32)

    # Parameter-time fusion (not in the per-forward path).
    w_full, b_re, b_im = prepare_complex_mult_params(weight, bias)

    fwd = jax.jit(complex_mult_add)
    out = fwd(inp, w_full, b_re, b_im)
    out = jax.block_until_ready(out)

    ref = _reference(inp, weight, bias)
    assert out.shape == (B, num_blocks, O, H, W, 2)
    assert jnp.allclose(out, ref, atol=1e-5, rtol=1e-5), "mismatch vs reference"

    print("KERNEL_OK")
</pallas_src>

<mosaic_0001>
module attributes {stable_mosaic.version = 11 : i64} {
  func.func @_complex_mult_kernel(%arg0: i32, %arg1: i32, %arg2: memref<1x32x512xf32, #tpu.memory_space<vmem>>, %arg3: memref<128x32xf32, #tpu.memory_space<vmem>>, %arg4: memref<64x1xf32, #tpu.memory_space<vmem>>, %arg5: memref<64x1xf32, #tpu.memory_space<vmem>>, %arg6: memref<1x64x512xf32, #tpu.memory_space<vmem>>) attributes {dimension_semantics = [#tpu.dimension_semantics<parallel>, #tpu.dimension_semantics<parallel>], iteration_bounds = array<i64: 2, 1>, scalar_prefetch = 0 : i64, scratch_operands = 0 : i64, tpu.core_type = #tpu.core_type<tc>, window_params = [{transform_indices = @transform_0, window_bounds = array<i64: 1, 32, 512>}, {pipeline_mode = #tpu.pipeline_mode<synchronous>, transform_indices = @transform_1, window_bounds = array<i64: 128, 32>}, {pipeline_mode = #tpu.pipeline_mode<synchronous>, transform_indices = @transform_2, window_bounds = array<i64: 64, 1>}, {pipeline_mode = #tpu.pipeline_mode<synchronous>, transform_indices = @transform_3, window_bounds = array<i64: 64, 1>}, {transform_indices = @transform_4, window_bounds = array<i64: 1, 64, 512>}]} {
    %c0 = arith.constant 0 : index
    %c0_0 = arith.constant 0 : index
    %c0_1 = arith.constant 0 : index
    %0 = vector.load %arg2[%c0, %c0_0, %c0_1] : memref<1x32x512xf32, #tpu.memory_space<vmem>>, vector<1x32x512xf32>
    %1 = vector.shape_cast %0 : vector<1x32x512xf32> to vector<32x512xf32>
    %c0_2 = arith.constant 0 : index
    %c0_3 = arith.constant 0 : index
    %2 = vector.load %arg3[%c0_2, %c0_3] : memref<128x32xf32, #tpu.memory_space<vmem>>, vector<128x32xf32>
    %cst = arith.constant dense<0.000000e+00> : vector<128x512xf32>
    %3 = tpu.matmul %2, %1, %cst {dimension_numbers = #tpu.dot_dimension_numbers<[1], [0], [0], [1], [0, 0, 1, 1], [], []>} : vector<128x32xf32>, vector<32x512xf32>, vector<128x512xf32> -> vector<128x512xf32>
    %4 = vector.extract_strided_slice %3 {offsets = [0, 0], sizes = [64, 512], strides = [1, 1]} : vector<128x512xf32> to vector<64x512xf32>
    %5 = vector.extract_strided_slice %3 {offsets = [64, 0], sizes = [64, 512], strides = [1, 1]} : vector<128x512xf32> to vector<64x512xf32>
    %6 = tpu.iota {dimensions = array<i32: 1>} : vector<64x512xi32>
    %c1_i32 = arith.constant 1 : i32
    %7 = vector.broadcast %c1_i32 : i32 to vector<64x512xi32>
    %8 = arith.andi %6, %7 : vector<64x512xi32>
    %c0_i32 = arith.constant 0 : i32
    %9 = vector.broadcast %c0_i32 : i32 to vector<64x512xi32>
    %10 = arith.cmpi eq, %8, %9 : vector<64x512xi32>
    %c511_i32 = arith.constant 511 : i32
    %11 = tpu.dynamic_rotate %5 by %c511_i32 dim 1 : vector<64x512xf32>, i32 -> vector<64x512xf32>
    %cst_4 = arith.constant 0.000000e+00 : f32
    %12 = vector.broadcast %cst_4 : f32 to vector<64x512xf32>
    %13 = arith.subf %12, %11 : vector<64x512xf32>
    %c1_i32_5 = arith.constant 1 : i32
    %14 = tpu.dynamic_rotate %5 by %c1_i32_5 dim 1 : vector<64x512xf32>, i32 -> vector<64x512xf32>
    %15 = arith.select %10, %13, %14 : vector<64x512xi1>, vector<64x512xf32>
    %c0_6 = arith.constant 0 : index
    %c0_7 = arith.constant 0 : index
    %16 = vector.load %arg4[%c0_6, %c0_7] : memref<64x1xf32, #tpu.memory_space<vmem>>, vector<64x1xf32>
    %c0_8 = arith.constant 0 : index
    %c0_9 = arith.constant 0 : index
    %17 = vector.load %arg5[%c0_8, %c0_9] : memref<64x1xf32, #tpu.memory_space<vmem>>, vector<64x1xf32>
    %18 = vector.shape_cast %16 : vector<64x1xf32> to vector<64x1xf32>
    %19 = vector.broadcast %18 : vector<64x1xf32> to vector<64x512xf32>
    %20 = vector.shape_cast %17 : vector<64x1xf32> to vector<64x1xf32>
    %21 = vector.broadcast %20 : vector<64x1xf32> to vector<64x512xf32>
    %22 = arith.select %10, %19, %21 : vector<64x512xi1>, vector<64x512xf32>
    %23 = arith.addf %4, %15 : vector<64x512xf32>
    %24 = arith.addf %23, %22 : vector<64x512xf32>
    %c0_10 = arith.constant 0 : index
    %c0_11 = arith.constant 0 : index
    %c0_12 = arith.constant 0 : index
    %25 = vector.load %arg6[%c0_10, %c0_11, %c0_12] : memref<1x64x512xf32, #tpu.memory_space<vmem>>, vector<1x64x512xf32>
    %26 = vector.shape_cast %25 : vector<1x64x512xf32> to vector<64x512xf32>
    %27 = vector.shape_cast %24 : vector<64x512xf32> to vector<1x64x512xf32>
    tpu.vector_store %arg6[%c0_10, %c0_11, %c0_12], %27 {strides = array<i32>} : memref<1x64x512xf32, #tpu.memory_space<vmem>>, vector<1x64x512xf32>,
    return
  }
  func.func @transform_0(%arg0: i32, %arg1: i32) -> (i32, i32, i32) {
    %c0_i32 = arith.constant 0 : i32
    %c0_i32_0 = arith.constant 0 : i32
    return %arg0, %c0_i32, %arg1 : i32, i32, i32
  }
  func.func @transform_1(%arg0: i32, %arg1: i32) -> (i32, i32) {
    %c0_i32 = arith.constant 0 : i32
    %c0_i32_0 = arith.constant 0 : i32
    %c0_i32_1 = arith.constant 0 : i32
    return %c0_i32, %c0_i32_0 : i32, i32
  }
  func.func @transform_2(%arg0: i32, %arg1: i32) -> (i32, i32) {
    %c0_i32 = arith.constant 0 : i32
    %c0_i32_0 = arith.constant 0 : i32
    %c0_i32_1 = arith.constant 0 : i32
    return %c0_i32, %c0_i32_0 : i32, i32
  }
  func.func @transform_3(%arg0: i32, %arg1: i32) -> (i32, i32) {
    %c0_i32 = arith.constant 0 : i32
    %c0_i32_0 = arith.constant 0 : i32
    %c0_i32_1 = arith.constant 0 : i32
    return %c0_i32, %c0_i32_0 : i32, i32
  }
  func.func @transform_4(%arg0: i32, %arg1: i32) -> (i32, i32, i32) {
    %c0_i32 = arith.constant 0 : i32
    %c0_i32_0 = arith.constant 0 : i32
    return %arg0, %c0_i32, %arg1 : i32, i32, i32
  }
}

</mosaic_0001>

<bundles_post_ra>
// kernel: complex_mult_add.1
= control target key start
LH: loop header
LB: loop body
LE: loop exit
PB: predicated region body
PF: predicated region fallthrough
CT: control target
= control target key end

     0   :  { %s1366_s15 = smov 0   ;;  %s1368_s16 = smov 0   ;;  %s2247_s0 = inlined_call_operand.vmem [shape: f32[2,32,512], index: 0, kind: input, shape index: {}]   ;;  %s2248_s1 = inlined_call_operand.vmem [shape: f32[128,32], index: 1, kind: input, shape index: {}]   ;;  %s2249_s2 = inlined_call_operand.vmem [shape: f32[64,1], index: 2, kind: input, shape index: {}]   ;;  %s2250_s3 = inlined_call_operand.vmem [shape: f32[64,1], index: 3, kind: input, shape index: {}]   ;;  %s2251_s4 = inlined_call_operand.vmem [shape: f32[2,64,512], index: 4, kind: output, shape index: {}]  }
   0x1   :  { %s1370_s17 = smov 0  }
   0x2 LB: > { %s26_s18 = sadd.s32 1, %s1331_s16  ;;  %p1226_p0 = scmp.ge.s32.totalorder %s1335_s17, 1  ;;  %s1335_s17 = sphi %s1370_s17, %s14_s17   ;;  %s1331_s16 = sphi %s1368_s16, %s2318_s16   ;;  %s1327_s15 = sphi %s1366_s15, %s2317_s15  }
   0x3   : > { %p28_p1 = scmp.ge.s32.totalorder %s26_s18, 2  ;;  %p183_p2 = scmp.lt.s32.totalorder %s1335_s17, 3 }
   0x5   : > { %s2320_s18 = smov (%p28_p1, %s26_s18), 0  ;;  %p184_p3 = pnand %p1226_p0, %p183_p2 }
   0x7   : > { %187 = sbr.rel (%p184_p3) target bundleno = 526 (0x20e), region = 36 }
   0xe   : > { %p218_p4 = scmp.lt.s32.totalorder %s1327_s15, 1  ;;  %v1337_v0 = vmov 0.0   ;;  %v1338_v1 = vmov 0   ;;  %v912_v2 = vld [vmem:[%s2249_s2 + $0x8] sm:$0xff]  ;;  %v911_v3 = vld [vmem:[%s2249_s2] sm:$0xff]  ;;  %v913_v27 = vld [vmem:[%s2249_s2 + $0x10] sm:$0xff] }
   0xf   : > { %382 = vmatprep.mubr.f32.mxu0 %v1337_v0  ;;  %543 = vmatprep.mubr.f32.mxu1 %v1337_v0  ;;  %v914_v28 = vld [vmem:[%s2249_s2 + $0x18] sm:$0xff]  ;;  %v253_v30 = vld [vmem:[%s2248_s1] sm:$0xff]  ;;  %vm269_vm0 = vcmask 261120   ;;  %v916_v32 = vld [vmem:[%s2249_s2 + $0x28] sm:$0xff]  ;;  %s1339_s21 = smov 127  }
  0x10   : > { %s2322_s15 = smov (!%p218_p4, %s1327_s15), 1  ;;  %1312 = vset.pattern.permute.xlu1 %v1338_v1  ;;  %1311 = vset.pattern.permute.xlu0 %v1338_v1  ;;  %v915_v31 = vld [vmem:[%s2249_s2 + $0x20] sm:$0xff]  ;;  %v254_v33 = vld [vmem:[%s2248_s1 + $0x8] sm:$0xff]  ;;  %v917_v34 = vld [vmem:[%s2249_s2 + $0x30] sm:$0xff] }
  0x11   : > { %s1265_s19 = sshll.u32 %s2322_s15, 7  ;;  %934 = vperm.xlu1 %1312, %v912_v2   ;;  %929 = vperm.xlu0 %1311, %v911_v3   ;;  %v918_v35 = vld [vmem:[%s2249_s2 + $0x38] sm:$0xff]  ;;  %v255_v36 = vld [vmem:[%s2248_s1 + $0x10] sm:$0xff]  ;;  %v919_v37 = vld [vmem:[%s2250_s3] sm:$0xff]  ;;  %v640_v3 = vlaneseq  ;;  %s1266_s23 = sshll.u32 %s2322_s15, 8 }
  0x12   : > { %s1392_s22 = scalar_lea.vmem %s2247_s0, %s1265_s19  ;;  %v920_v38 = vld [vmem:[%s2250_s3 + $0x8] sm:$0xff]  ;;  %v256_v39 = vld [vmem:[%s2248_s1 + $0x18] sm:$0xff]  ;;  %v921_v40 = vld [vmem:[%s2250_s3 + $0x10] sm:$0xff]  ;;  %s1876_s25 = scalar_lea.vmem %s2251_s4, %s1266_s23 }
  0x13   : > { %v238_v4 = vld [vmem:[%s1392_s22 + $0x8] sm:$0xff]  ;;  %v240_v6 = vld [vmem:[%s1392_s22 + $0x18] sm:$0xff]  ;;  %v237_v9 = vld [vmem:[%s1392_s22] sm:$0xff] }
  0x14   : > { %v242_v5 = vld [vmem:[%s1392_s22 + $0x28] sm:$0xff]  ;;  %v244_v8 = vld [vmem:[%s1392_s22 + $0x38] sm:$0xff]  ;;  %v241_v10 = vld [vmem:[%s1392_s22 + $0x20] sm:$0xff] }
  0x15   : > { %v1267_v7 = vpack.c.bf16 %v242_v5, %v238_v4  ;;  %v1275_v11 = vpack.c.bf16 %v244_v8, %v240_v6  ;;  %v1269_v12 = vpack.c.bf16 %v241_v10, %v237_v9  ;;  %v239_v13 = vld [vmem:[%s1392_s22 + $0x10] sm:$0xff]  ;;  %v246_v15 = vld [vmem:[%s1392_s22 + $0x48] sm:$0xff]  ;;  %v248_v18 = vld [vmem:[%s1392_s22 + $0x58] sm:$0xff]  ;;  %939 = vperm.xlu1 %1312, %v913_v27   ;;  %944 = vperm.xlu0 %1311, %v914_v28   ;;  %v1588_v5 = vand.u32 127, %v640_v3 }
  0x16   : > { %v243_v14 = vld [vmem:[%s1392_s22 + $0x30] sm:$0xff]  ;;  %v250_v17 = vld [vmem:[%s1392_s22 + $0x68] sm:$0xff]  ;;  %v252_v19 = vld [vmem:[%s1392_s22 + $0x78] sm:$0xff] }
  0x17   : > { %1268 = vmatprep.subr.bf16.mxu0 %v1267_v7  ;;  %v1277_v16 = vpack.c.bf16 %v243_v14, %v239_v13  ;;  %1276 = vmatprep.subr.bf16.mxu1 %v1275_v11  ;;  %v1271_v20 = vpack.c.bf16 %v250_v17, %v246_v15  ;;  %v1279_v21 = vpack.c.bf16 %v252_v19, %v248_v18  ;;  %v245_v22 = vld [vmem:[%s1392_s22 + $0x40] sm:$0xff]  ;;  %v247_v24 = vld [vmem:[%s1392_s22 + $0x50] sm:$0xff]  ;;  %v922_v41 = vld [vmem:[%s2250_s3 + $0x18] sm:$0xff]  ;;  %v642_v6 = vadd.s32 128, %v1588_v5 }
  0x18   : > { %1270 = vmatpush1.bf16.msra.mxu0 %v1269_v12  ;;  %v249_v23 = vld [vmem:[%s1392_s22 + $0x60] sm:$0xff]  ;;  %v251_v26 = vld [vmem:[%s1392_s22 + $0x70] sm:$0xff]  ;;  %v924_v44 = vld [vmem:[%s2250_s3 + $0x28] sm:$0xff]  ;;  %v643_v7 = vadd.s32 256, %v1588_v5  ;;  %v644_v8 = vadd.s32 384, %v1588_v5  ;;  %v645_v9 = vand.u32 1, %v1588_v5 }
  0x19   : > { %1278 = vmatpush1.bf16.msra.mxu1 %v1277_v16  ;;  %v1273_v25 = vpack.c.bf16 %v249_v23, %v245_v22  ;;  %1272 = vmatprep.subr.bf16.mxu0 %v1271_v20  ;;  %v1281_v29 = vpack.c.bf16 %v251_v26, %v247_v24  ;;  %v257_v42 = vld [vmem:[%s2248_s1 + $0x20] sm:$0xff]  ;;  %v258_v45 = vld [vmem:[%s2248_s1 + $0x28] sm:$0xff]  ;;  %v925_v46 = vld [vmem:[%s2250_s3 + $0x30] sm:$0xff]  ;;  %v646_v11 = vand.u32 1, %v642_v6  ;;  %s1340_s22 = smov 1   ;;  %vm717_vm5 = vcmp.lt.s32.totalorder %v1588_v5, 127 }
  0x1a   : > { %1280 = vmatprep.subr.bf16.mxu1 %v1279_v21  ;;  %949 = vperm.xlu1 %1312, %v915_v31   ;;  %v923_v43 = vld [vmem:[%s2250_s3 + $0x20] sm:$0xff]  ;;  %v926_v47 = vld [vmem:[%s2250_s3 + $0x38] sm:$0xff]  ;;  %v259_v48 = vld [vmem:[%s2248_s1 + $0x30] sm:$0xff]  ;;  %v647_v12 = vand.u32 1, %v643_v7  ;;  %v648_v13 = vand.u32 1, %v644_v8  ;;  %vm1596_vm1 = vcmp.eq.s32.totalorder %v645_v9, 0 }
  0x1b   : > { %954 = vperm.xlu0 %1311, %v916_v32   ;;  %v260_v49 = vld [vmem:[%s2248_s1 + $0x38] sm:$0xff]  ;;  %v261_v50 = vld [vmem:[%s2248_s1 + $0x40] sm:$0xff]  ;;  %v262_v51 = vld [vmem:[%s2248_s1 + $0x48] sm:$0xff]  ;;  %vm1610_vm2 = vcmp.eq.s32.totalorder %v646_v11, 0  ;;  %vm846_vm6 = vcmp.lt.s32.totalorder %v1588_v5, 1 }
  0x1c   : > { %1274 = vmatpush1.bf16.msra.mxu0 %v1273_v25  ;;  %v263_v52 = vld [vmem:[%s2248_s1 + $0x50] sm:$0xff]  ;;  %v264_v53 = vld [vmem:[%s2248_s1 + $0x58] sm:$0xff]  ;;  %v265_v54 = vld [vmem:[%s2248_s1 + $0x60] sm:$0xff]  ;;  %vm1614_vm3 = vcmp.eq.s32.totalorder %v647_v12, 0  ;;  %vm1618_vm4 = vcmp.eq.s32.totalorder %v648_v13, 0 }
  0x1d   : > { %1282 = vmatpush1.bf16.msra.mxu1 %v1281_v29  ;;  %v266_v55 = vld [vmem:[%s2248_s1 + $0x68] sm:$0xff]  ;;  %v267_v56 = vld [vmem:[%s2248_s1 + $0x70] sm:$0xff]  ;;  %v268_v57 = vld [vmem:[%s2248_s1 + $0x78] sm:$0xff] }
  0x1e   : > { %959 = vperm.xlu1 %1312, %v917_v34  }
  0x1f   : > { %1231 = vmatmul.mubr.msk.f32.vlgmr.msra.gmra.mrb[0].mxu0 %vm269_vm0, %v253_v30  ;;  %964 = vperm.xlu0 %1311, %v918_v35  }
  0x20   : > { %1247 = vmatmul.mubr.msk.f32.vlgmr.msra.gmra.mrb[0].mxu1 %vm269_vm0, %v253_v30  ;;  %388 = vmatprep.mubr.f32.mxu0 %v1337_v0 }
  0x21   : > { %549 = vmatprep.mubr.f32.mxu1 %v1337_v0 }
  0x22   : > { %969 = vperm.xlu1 %1312, %v919_v37  }
  0x23   : > { %1232 = vmatmul.mubr.msk.f32.gmra.mrb[2].mxu0 %vm269_vm0, %v254_v33  ;;  %974 = vperm.xlu0 %1311, %v920_v38  }
  0x24   : > { %1248 = vmatmul.mubr.msk.f32.gmra.mrb[2].mxu1 %vm269_vm0, %v254_v33  ;;  %394 = vmatprep.mubr.f32.mxu0 %v1337_v0 }
  0x25   : > { %555 = vmatprep.mubr.f32.mxu1 %v1337_v0 }
  0x26   : > { %979 = vperm.xlu1 %1312, %v921_v40  }
  0x27   : > { %1233 = vmatmul.mubr.msk.f32.gmra.mrb[4].mxu0 %vm269_vm0, %v255_v36  ;;  %984 = vperm.xlu0 %1311, %v922_v41  }
  0x28   : > { %1249 = vmatmul.mubr.msk.f32.gmra.mrb[4].mxu1 %vm269_vm0, %v255_v36  ;;  %400 = vmatprep.mubr.f32.mxu0 %v1337_v0 }
  0x29   : > { %561 = vmatprep.mubr.f32.mxu1 %v1337_v0 }
  0x2a   : > { %989 = vperm.xlu1 %1312, %v923_v43  }
  0x2b   : > { %1234 = vmatmul.mubr.msk.f32.gmra.mrb[6].mxu0 %vm269_vm0, %v256_v39  ;;  %994 = vperm.xlu0 %1311, %v924_v44  }
  0x2c   : > { %1250 = vmatmul.mubr.msk.f32.gmra.mrb[6].mxu1 %vm269_vm0, %v256_v39  ;;  %406 = vmatprep.mubr.f32.mxu0 %v1337_v0 }
  0x2d   : > { %567 = vmatprep.mubr.f32.mxu1 %v1337_v0 }
  0x2e   : > { %999 = vperm.xlu1 %1312, %v925_v46  }
  0x2f   : > { %1235 = vmatmul.mubr.msk.f32.gmra.mrb[8].mxu0 %vm269_vm0, %v257_v42  ;;  %1004 = vperm.xlu0 %1311, %v926_v47  }
  0x30   : > { %1251 = vmatmul.mubr.msk.f32.gmra.mrb[8].mxu1 %vm269_vm0, %v257_v42  ;;  %412 = vmatprep.mubr.f32.mxu0 %v1337_v0 }
  0x31   : > { %573 = vmatprep.mubr.f32.mxu1 %v1337_v0 }
  0x33   : > { %1236 = vmatmul.mubr.msk.f32.gmra.mrb[10].mxu0 %vm269_vm0, %v258_v45 }
  0x34   : > { %1252 = vmatmul.mubr.msk.f32.gmra.mrb[10].mxu1 %vm269_vm0, %v258_v45  ;;  %418 = vmatprep.mubr.f32.mxu0 %v1337_v0 }
  0x35   : > { %579 = vmatprep.mubr.f32.mxu1 %v1337_v0 }
  0x37   : > { %1237 = vmatmul.mubr.msk.f32.gmra.mrb[12].mxu0 %vm269_vm0, %v259_v48 }
  0x38   : > { %1253 = vmatmul.mubr.msk.f32.gmra.mrb[12].mxu1 %vm269_vm0, %v259_v48  ;;  %424 = vmatprep.mubr.f32.mxu0 %v1337_v0 }
  0x39   : > { %585 = vmatprep.mubr.f32.mxu1 %v1337_v0 }
  0x3b   : > { %1238 = vmatmul.mubr.msk.f32.gmra.mrb[14].mxu0 %vm269_vm0, %v260_v49 }
  0x3c   : > { %1254 = vmatmul.mubr.msk.f32.gmra.mrb[14].mxu1 %vm269_vm0, %v260_v49  ;;  %430 = vmatprep.mubr.f32.mxu0 %v1337_v0 }
  0x3d   : > { %591 = vmatprep.mubr.f32.mxu1 %v1337_v0 }
  0x3f   : > { %1239 = vmatmul.mubr.msk.f32.gmra.mrb[16].mxu0 %vm269_vm0, %v261_v50 }
  0x40   : > { %1255 = vmatmul.mubr.msk.f32.gmra.mrb[16].mxu1 %vm269_vm0, %v261_v50  ;;  %436 = vmatprep.mubr.f32.mxu0 %v1337_v0 }
  0x41   : > { %597 = vmatprep.mubr.f32.mxu1 %v1337_v0 }
  0x43   : > { %1240 = vmatmul.mubr.msk.f32.gmra.mrb[18].mxu0 %vm269_vm0, %v262_v51 }
  0x44   : > { %1256 = vmatmul.mubr.msk.f32.gmra.mrb[18].mxu1 %vm269_vm0, %v262_v51  ;;  %442 = vmatprep.mubr.f32.mxu0 %v1337_v0 }
  0x45   : > { %603 = vmatprep.mubr.f32.mxu1 %v1337_v0 }
  0x47   : > { %1241 = vmatmul.mubr.msk.f32.gmra.mrb[20].mxu0 %vm269_vm0, %v263_v52 }
  0x48   : > { %448 = vmatprep.mubr.f32.mxu0 %v1337_v0  ;;  %1257 = vmatmul.mubr.msk.f32.gmra.mrb[20].mxu1 %vm269_vm0, %v263_v52 }
  0x49   : > { %609 = vmatprep.mubr.f32.mxu1 %v1337_v0 }
  0x4b   : > { %1242 = vmatmul.mubr.msk.f32.gmra.mrb[22].mxu0 %vm269_vm0, %v264_v53 }
  0x4c   : > { %1258 = vmatmul.mubr.msk.f32.gmra.mrb[22].mxu1 %vm269_vm0, %v264_v53  ;;  %454 = vmatprep.mubr.f32.mxu0 %v1337_v0 }
  0x4d   : > { %615 = vmatprep.mubr.f32.mxu1 %v1337_v0 }
  0x4f   : > { %1243 = vmatmul.mubr.msk.f32.gmra.mrb[24].mxu0 %vm269_vm0, %v265_v54 }
  0x50   : > { %460 = vmatprep.mubr.f32.mxu0 %v1337_v0  ;;  %1259 = vmatmul.mubr.msk.f32.gmra.mrb[24].mxu1 %vm269_vm0, %v265_v54 }
  0x51   : > { %621 = vmatprep.mubr.f32.mxu1 %v1337_v0 }
  0x53   : > { %1244 = vmatmul.mubr.msk.f32.gmra.mrb[26].mxu0 %vm269_vm0, %v266_v55 }
  0x54   : > { %1260 = vmatmul.mubr.msk.f32.gmra.mrb[26].mxu1 %vm269_vm0, %v266_v55  ;;  %466 = vmatprep.mubr.f32.mxu0 %v1337_v0 }
  0x55   : > { %627 = vmatprep.mubr.f32.mxu1 %v1337_v0 }
  0x57   : > { %1245 = vmatmul.mubr.msk.f32.gmra.mrb[28].mxu0 %vm269_vm0, %v267_v56 }
  0x58   : > { %472 = vmatprep.mubr.f32.mxu0 %v1337_v0  ;;  %1261 = vmatmul.mubr.msk.f32.gmra.mrb[28].mxu1 %vm269_vm0, %v267_v56 }
  0x59   : > { %633 = vmatprep.mubr.f32.mxu1 %v1337_v0 }
  0x5b   : > { %1246 = vmatmul.mubr.msk.f32.gmra.mrb[30].mxu0 %vm269_vm0, %v268_v57 }
  0x5c   : > { %1262 = vmatmul.mubr.msk.f32.gmra.mrb[30].mxu1 %vm269_vm0, %v268_v57 }
  0x90   : > { %v1568_v58 = vpop.permute.xlu1 %934  ;;  %v1570_v59 = vpop.permute.xlu0 %929 }
  0x94   : > { %v1572_v60 = vpop.permute.xlu1 %939  ;;  %v1574_v61 = vpop.permute.xlu0 %944 }
  0x99   : > { %v1576_v62 = vpop.permute.xlu1 %949 }
  0x9a   : > { %v1578_v63 = vpop.permute.xlu0 %954 }
  0x9b   : > { %2259 = vst [vmem:[#allocation2_spill] sm:$0xff] %v1578_v63 }
  0x9d   : > { %v1580_v1 = vpop.permute.xlu1 %959 }
  0x9e   : > { %2260 = vst [vmem:[#allocation3_spill] sm:$0xff] %v1580_v1  ;;  %v1582_v2 = vpop.permute.xlu0 %964 }
  0x9f   : > { %2261 = vst [vmem:[#allocation4_spill] sm:$0xff] %v1582_v2 }
  0xa1   : > { %v1584_v0 = vpop.permute.xlu1 %969 }
  0xa2   : > { %v1586_v4 = vpop.permute.xlu0 %974 }
  0xa5   : > { %v1594_v10 = vpop.permute.xlu1 %979 }
  0xa6   : > { %v1600_v15 = vpop.permute.xlu0 %984 }
  0xa9   : > { %v1646_v27 = vpop.permute.xlu1 %989 }
  0xaa   : > { %v1664_v32 = vpop.permute.xlu0 %994 }
  0xab   : > { %2270 = vst [vmem:[#allocation5_spill] sm:$0xff] %v1664_v32 }
  0xf2   : > { %v1682_v37 = vpop.f32.mrb[0].mxu0 }
  0xf3   : > { %v1684_v38 = vpop.f32.mrb[0].mxu1  ;;  %v1686_v39 = vpop.f32.mrb[1].mxu0 }
  0xf4   : > { %v1688_v40 = vpop.f32.mrb[1].mxu1 }
  0xf6   : > { %v1690_v41 = vpop.f32.mrb[2].mxu0 }
  0xf7   : > { %v1692_v42 = vpop.f32.mrb[2].mxu1  ;;  %v1694_v43 = vpop.f32.mrb[3].mxu0 }
  0xf8   : > { %v1696_v44 = vpop.f32.mrb[3].mxu1 }
  0xfa   : > { %v1698_v45 = vpop.f32.mrb[4].mxu0 }
  0xfb   : > { %v1700_v46 = vpop.f32.mrb[4].mxu1  ;;  %v1702_v47 = vpop.f32.mrb[5].mxu0 }
  0xfc   : > { %v1704_v48 = vpop.f32.mrb[5].mxu1 }
  0xfe   : > { %v1706_v49 = vpop.f32.mrb[6].mxu0 }
  0xff   : > { %v1708_v50 = vpop.f32.mrb[6].mxu1  ;;  %v1710_v51 = vpop.f32.mrb[7].mxu0 }
 0x100   : > { %v1712_v52 = vpop.f32.mrb[7].mxu1 }
 0x102   : > { %v1714_v53 = vpop.f32.mrb[8].mxu0 }
 0x103   : > { %v1716_v54 = vpop.f32.mrb[8].mxu1  ;;  %v1718_v55 = vpop.f32.mrb[9].mxu0 }
 0x104   : > { %v1720_v56 = vpop.f32.mrb[9].mxu1 }
 0x106   : > { %v1722_v57 = vpop.f32.mrb[10].mxu0 }
 0x107   : > { %2271 = vst [vmem:[#allocation6_spill] sm:$0xff] %v1722_v57  ;;  %v1724_v3 = vpop.f32.mrb[10].mxu1  ;;  %v1726_v6 = vpop.f32.mrb[11].mxu0 }
 0x108   : > { %2272 = vst [vmem:[#allocation7_spill] sm:$0xff] %v1724_v3  ;;  %2273 = vst [vmem:[#allocation8_spill] sm:$0xff] %v1726_v6  ;;  %v1728_v7 = vpop.f32.mrb[11].mxu1 }
 0x109   : > { %2274 = vst [vmem:[#allocation9_spill] sm:$0xff] %v1728_v7 }
 0x10a   : > { %v1730_v8 = vpop.f32.mrb[12].mxu0 }
 0x10b   : > { %2275 = vst [vmem:[#allocation10_spill] sm:$0xff] %v1730_v8  ;;  %v1732_v9 = vpop.f32.mrb[12].mxu1  ;;  %v1734_v11 = vpop.f32.mrb[13].mxu0 }
 0x10c   : > { %2276 = vst [vmem:[#allocation11_spill] sm:$0xff] %v1732_v9  ;;  %2277 = vst [vmem:[#allocation12_spill] sm:$0xff] %v1734_v11  ;;  %v1736_v12 = vpop.f32.mrb[13].mxu1 }
 0x10d   : > { %2278 = vst [vmem:[#allocation13_spill] sm:$0xff] %v1736_v12 }
 0x10e   : > { %v1738_v13 = vpop.f32.mrb[14].mxu0 }
 0x10f   : > { %2279 = vst [vmem:[#allocation14_spill] sm:$0xff] %v1738_v13  ;;  %v1740_v36 = vpop.f32.mrb[14].mxu1  ;;  %v1742_v33 = vpop.f32.mrb[15].mxu0 }
 0x110   : > { %2280 = vst [vmem:[#allocation15_spill] sm:$0xff] %v1740_v36  ;;  %2281 = vst [vmem:[#allocation16_spill] sm:$0xff] %v1742_v33  ;;  %v1744_v35 = vpop.f32.mrb[15].mxu1 }
 0x111   : > { %2282 = vst [vmem:[#allocation17_spill] sm:$0xff] %v1744_v35 }
 0x112   : > { %v432_v34 = vpop.f32.mrb[16].mxu0 }
 0x113   : > { %v593_v31 = vpop.f32.mrb[16].mxu1  ;;  %653 = vrot.lane.b32.xlu0 %v432_v34, %s1339_s21  ;;  %v434_v28 = vpop.f32.mrb[17].mxu0 }
 0x114   : > { %v595_v30 = vpop.f32.mrb[17].mxu1 }
 0x116   : > { %v438_v29 = vpop.f32.mrb[18].mxu0 }
 0x117   : > { %v599_v26 = vpop.f32.mrb[18].mxu1  ;;  %685 = vrot.lane.b32.xlu0 %v593_v31, %s1339_s21  ;;  %v440_v17 = vpop.f32.mrb[19].mxu0  ;;  %v2314_v18 = vld [vmem:[#allocation15_spill] sm:$0xff] }
 0x118   : > { %687 = vrot.lane.b32.xlu1 %v599_v26, %s1339_s21  ;;  %v601_v25 = vpop.f32.mrb[19].mxu1 }
 0x11a   : > { %v444_v24 = vpop.f32.mrb[20].mxu0 }
 0x11b   : > { %782 = vrot.lane.b32.xlu0 %v432_v34, %s1340_s22  ;;  %v446_v23 = vpop.f32.mrb[21].mxu0  ;;  %v605_v16 = vpop.f32.mrb[20].mxu1 }
 0x11c   : > { %784 = vrot.lane.b32.xlu1 %v438_v29, %s1340_s22  ;;  %v607_v22 = vpop.f32.mrb[21].mxu1 }
 0x11e   : > { %v450_v21 = vpop.f32.mrb[22].mxu0 }
 0x11f   : > { %814 = vrot.lane.b32.xlu0 %v593_v31, %s1340_s22  ;;  %v452_v12 = vpop.f32.mrb[23].mxu0  ;;  %v611_v8 = vpop.f32.mrb[22].mxu1 }
 0x120   : > { %816 = vrot.lane.b32.xlu1 %v599_v26, %s1340_s22  ;;  %v613_v36 = vpop.f32.mrb[23].mxu1 }
 0x122   : > { %v456_v33 = vpop.f32.mrb[24].mxu0 }
 0x123   : > { %669 = vrot.lane.b32.xlu0 %v434_v28, %s1339_s21  ;;  %v458_v35 = vpop.f32.mrb[25].mxu0  ;;  %v617_v13 = vpop.f32.mrb[24].mxu1 }
 0x124   : > { %671 = vrot.lane.b32.xlu1 %v440_v17, %s1339_s21  ;;  %v619_v34 = vpop.f32.mrb[25].mxu1 }
 0x126   : > { %v462_v9 = vpop.f32.mrb[26].mxu0 }
 0x127   : > { %701 = vrot.lane.b32.xlu0 %v595_v30, %s1339_s21  ;;  %v464_v11 = vpop.f32.mrb[27].mxu0  ;;  %v623_v2 = vpop.f32.mrb[26].mxu1 }
 0x128   : > { %703 = vrot.lane.b32.xlu1 %v601_v25, %s1339_s21  ;;  %v625_v31 = vpop.f32.mrb[27].mxu1 }
 0x12a   : > { %v468_v1 = vpop.f32.mrb[28].mxu0 }
 0x12b   : > { %798 = vrot.lane.b32.xlu0 %v434_v28, %s1340_s22  ;;  %v470_v26 = vpop.f32.mrb[29].mxu0  ;;  %v629_v7 = vpop.f32.mrb[28].mxu1 }
 0x12c   : > { %800 = vrot.lane.b32.xlu1 %v440_v17, %s1340_s22  ;;  %v1759_v57 = vpop.f32.mrb[29].mxu1  ;;  %v1807_v17 = vpop.permute.xlu1 %999 }
 0x12e   : > { %v474_v32 = vpop.f32.mrb[30].mxu0 }
 0x12f   : > { %830 = vrot.lane.b32.xlu0 %v595_v30, %s1340_s22  ;;  %v476_v63 = vpop.f32.mrb[31].mxu0  ;;  %v635_v3 = vpop.f32.mrb[30].mxu1 }
 0x130   : > { %832 = vrot.lane.b32.xlu1 %v601_v25, %s1340_s22  ;;  %v637_v6 = vpop.f32.mrb[31].mxu1 }
 0x133   : > { %655 = vrot.lane.b32.xlu0 %v438_v29, %s1339_s21 }
 0x134   : > { %657 = vrot.lane.b32.xlu1 %v444_v24, %s1339_s21 }
 0x137   : > { %689 = vrot.lane.b32.xlu0 %v605_v16, %s1339_s21 }
 0x138   : > { %659 = vrot.lane.b32.xlu1 %v450_v21, %s1339_s21 }
 0x13b   : > { %786 = vrot.lane.b32.xlu0 %v444_v24, %s1340_s22 }
 0x13c   : > { %691 = vrot.lane.b32.xlu1 %v611_v8, %s1339_s21 }
 0x13f   : > { %818 = vrot.lane.b32.xlu0 %v605_v16, %s1340_s22 }
 0x140   : > { %788 = vrot.lane.b32.xlu1 %v450_v21, %s1340_s22 }
 0x143   : > { %673 = vrot.lane.b32.xlu0 %v446_v23, %s1339_s21 }
 0x144   : > { %820 = vrot.lane.b32.xlu1 %v611_v8, %s1340_s22 }
 0x147   : > { %705 = vrot.lane.b32.xlu0 %v607_v22, %s1339_s21 }
 0x148   : > { %675 = vrot.lane.b32.xlu1 %v452_v12, %s1339_s21 }
 0x14b   : > { %802 = vrot.lane.b32.xlu0 %v446_v23, %s1340_s22 }
 0x14c   : > { %707 = vrot.lane.b32.xlu1 %v613_v36, %s1339_s21 }
 0x14f   : > { %834 = vrot.lane.b32.xlu0 %v607_v22, %s1340_s22 }
 0x150   : > { %804 = vrot.lane.b32.xlu1 %v452_v12, %s1340_s22 }
 0x153   : > { %661 = vrot.lane.b32.xlu0 %v456_v33, %s1339_s21 }
 0x154   : > { %836 = vrot.lane.b32.xlu1 %v613_v36, %s1340_s22 }
 0x157   : > { %693 = vrot.lane.b32.xlu0 %v617_v13, %s1339_s21 }
 0x158   : > { %663 = vrot.lane.b32.xlu1 %v462_v9, %s1339_s21 }
 0x15b   : > { %790 = vrot.lane.b32.xlu0 %v456_v33, %s1340_s22 }
 0x15c   : > { %695 = vrot.lane.b32.xlu1 %v623_v2, %s1339_s21 }
 0x15f   : > { %822 = vrot.lane.b32.xlu0 %v617_v13, %s1340_s22 }
 0x160   : > { %792 = vrot.lane.b32.xlu1 %v462_v9, %s1340_s22 }
 0x163   : > { %677 = vrot.lane.b32.xlu0 %v458_v35, %s1339_s21 }
 0x164   : > { %824 = vrot.lane.b32.xlu1 %v623_v2, %s1340_s22  ;;  %v1803_v2 = vpop.permute.xlu0 %1004 }
 0x165   : > { %2283 = vst [vmem:[#allocation18_spill] sm:$0xff] %v1803_v2 }
 0x167   : > { %709 = vrot.lane.b32.xlu0 %v619_v34, %s1339_s21 }
 0x168   : > { %679 = vrot.lane.b32.xlu1 %v464_v11, %s1339_s21 }
 0x16b   : > { %806 = vrot.lane.b32.xlu0 %v458_v35, %s1340_s22 }
 0x16c   : > { %711 = vrot.lane.b32.xlu1 %v625_v31, %s1339_s21 }
 0x16f   : > { %838 = vrot.lane.b32.xlu0 %v619_v34, %s1340_s22 }
 0x170   : > { %808 = vrot.lane.b32.xlu1 %v464_v11, %s1340_s22 }
 0x173   : > { %665 = vrot.lane.b32.xlu0 %v468_v1, %s1339_s21 }
 0x174   : > { %840 = vrot.lane.b32.xlu1 %v625_v31, %s1340_s22 }
 0x177   : > { %697 = vrot.lane.b32.xlu0 %v629_v7, %s1339_s21 }
 0x178   : > { %667 = vrot.lane.b32.xlu1 %v474_v32, %s1339_s21 }
 0x17b   : > { %794 = vrot.lane.b32.xlu0 %v468_v1, %s1340_s22 }
 0x17c   : > { %699 = vrot.lane.b32.xlu1 %v635_v3, %s1339_s21 }
 0x17f   : > { %826 = vrot.lane.b32.xlu0 %v629_v7, %s1340_s22  ;;  %v1013_v7 = vsel %vm1614_vm3, %v1568_v58, %v1586_v4 }
 0x180   : > { %796 = vrot.lane.b32.xlu1 %v474_v32, %s1340_s22 }
 0x183   : > { %681 = vrot.lane.b32.xlu0 %v470_v26, %s1339_s21 }
 0x184   : > { %828 = vrot.lane.b32.xlu1 %v635_v3, %s1340_s22  ;;  %v1009_v3 = vsel %vm1614_vm3, %v1570_v59, %v1584_v0 }
 0x185   : > { %v654_v16 = vpop.permute.xlu0 %653 }
 0x187   : > { %713 = vrot.lane.b32.xlu0 %v1759_v57, %s1339_s21 }
 0x188   : > { %683 = vrot.lane.b32.xlu1 %v476_v63, %s1339_s21 }
 0x189   : > { %v686_v1 = vpop.permute.xlu0 %685 }
 0x18a   : > { %v688_v21 = vpop.permute.xlu1 %687 }
 0x18b   : > { %810 = vrot.lane.b32.xlu0 %v470_v26, %s1340_s22 }
 0x18c   : > { %715 = vrot.lane.b32.xlu1 %v637_v6, %s1339_s21 }
 0x18d   : > { %v783_v22 = vpop.permute.xlu0 %782 }
 0x18e   : > { %v1814_v23 = vpop.permute.xlu1 %784 }
 0x18f   : > { %844 = vrot.lane.b32.xlu0 %v637_v6, %s1340_s22  ;;  %v1012_v6 = vsel %vm1610_vm2, %v1568_v58, %v1586_v4 }
 0x190   : > { %812 = vrot.lane.b32.xlu1 %v476_v63, %s1340_s22 }
 0x191   : > { %v815_v24 = vpop.permute.xlu0 %814 }
 0x192   : > { %v1818_v25 = vpop.permute.xlu1 %816 }
 0x194   : > { %842 = vrot.lane.b32.xlu1 %v1759_v57, %s1340_s22  ;;  %v1008_v57 = vsel %vm1610_vm2, %v1570_v59, %v1584_v0 }
 0x195   : > { %v670_v28 = vpop.permute.xlu0 %669 }
 0x196   : > { %v672_v29 = vpop.permute.xlu1 %671  ;;  %v726_v32 = vsel %vm717_vm5, %v670_v28, %v686_v1  ;;  %v734_v8 = vsel %vm717_vm5, %v654_v16, %v670_v28 }
 0x197   : > { %v727_v33 = vsel %vm717_vm5, %v672_v29, %v688_v21  ;;  %v751_v9 = vsub.f32 0.0, %v726_v32 }
 0x198   : > { %v755_v11 = vsub.f32 0.0, %v727_v33 }
 0x199   : > { %v702_v30 = vpop.permute.xlu0 %701 }
 0x19a   : > { %v718_v63 = vsel %vm717_vm5, %v686_v1, %v702_v30  ;;  %v704_v35 = vpop.permute.xlu1 %703  ;;  %v742_v34 = vsel %vm717_vm5, %v702_v30, %v654_v16 }
 0x19b   : > { %v719_v36 = vsel %vm717_vm5, %v688_v21, %v704_v35  ;;  %v752_v12 = vsub.f32 0.0, %v718_v63 }
 0x19c   : > { %v756_v31 = vsub.f32 0.0, %v719_v36 }
 0x19d   : > { %v799_v13 = vpop.permute.xlu0 %798 }
 0x19e   : > { %v855_v26 = vsel %vm846_vm6, %v799_v13, %v815_v24  ;;  %v863_v1 = vsel %vm846_vm6, %v783_v22, %v799_v13  ;;  %v801_v21 = vpop.permute.xlu1 %800 }
 0x19f   : > { %v880_v2 = vsel %vm1610_vm2, %v751_v9, %v863_v1  ;;  %v881_v28 = vsel %vm1614_vm3, %v752_v12, %v855_v26  ;;  %v856_v32 = vsel %vm846_vm6, %v801_v21, %v1818_v25  ;;  %v864_v16 = vsel %vm846_vm6, %v1814_v23, %v801_v21 }
 0x1a0   : > { %v1040_v30 = vadd.f32 %v880_v2, %v1686_v39  ;;  %v1041_v33 = vadd.f32 %v881_v28, %v1684_v38  ;;  %v884_v63 = vsel %vm1610_vm2, %v755_v11, %v864_v16  ;;  %v885_v36 = vsel %vm1614_vm3, %v756_v31, %v856_v32 }
 0x1a1   : > { %v750_v9 = vsub.f32 0.0, %v734_v8  ;;  %v753_v12 = vsub.f32 0.0, %v742_v34  ;;  %v1044_v13 = vadd.f32 %v884_v63, %v1694_v43  ;;  %v1045_v39 = vadd.f32 %v885_v36, %v1692_v42  ;;  %v831_v38 = vpop.permute.xlu0 %830 }
 0x1a2   : > { %v1072_v2 = vadd.f32 %v1040_v30, %v1008_v57  ;;  %v1073_v11 = vadd.f32 %v1041_v33, %v1009_v3  ;;  %v847_v31 = vsel %vm846_vm6, %v815_v24, %v831_v38  ;;  %v871_v26 = vsel %vm846_vm6, %v831_v38, %v783_v22  ;;  %v833_v1 = vpop.permute.xlu1 %832 }
 0x1a3   : > { %v1076_v21 = vadd.f32 %v1044_v13, %v1012_v6  ;;  %v1077_v28 = vadd.f32 %v1045_v39, %v1013_v7  ;;  %v879_v8 = vsel %vm1596_vm1, %v750_v9, %v871_v26  ;;  %v882_v42 = vsel %vm1618_vm4, %v753_v12, %v847_v31 }
 0x1a4   : > { %1104 = vst [vmem:[%s1876_s25 + $0x8] sm:$0xff] %v1072_v2  ;;  %1105 = vst [vmem:[%s1876_s25 + $0x10] sm:$0xff] %v1073_v11  ;;  %v1039_v43 = vadd.f32 %v879_v8, %v1682_v37  ;;  %v1042_v24 = vadd.f32 %v882_v42, %v1688_v40  ;;  %v1007_v22 = vsel %vm1596_vm1, %v1570_v59, %v1584_v0 }
 0x1a5   : > { %v1010_v57 = vsel %vm1618_vm4, %v1570_v59, %v1584_v0  ;;  %1108 = vst [vmem:[%s1876_s25 + $0x28] sm:$0xff] %v1076_v21  ;;  %1109 = vst [vmem:[%s1876_s25 + $0x30] sm:$0xff] %v1077_v28  ;;  %v656_v3 = vpop.permute.xlu0 %655  ;;  %v848_v59 = vsel %vm846_vm6, %v1818_v25, %v833_v1  ;;  %v872_v0 = vsel %vm846_vm6, %v833_v1, %v1814_v23 }
 0x1a6   : > { %v1071_v6 = vadd.f32 %v1039_v43, %v1007_v22  ;;  %v1074_v7 = vadd.f32 %v1042_v24, %v1010_v57  ;;  %v735_v37 = vsel %vm717_vm5, %v656_v3, %v672_v29  ;;  %v743_v40 = vsel %vm717_vm5, %v704_v35, %v656_v3  ;;  %v658_v34 = vpop.permute.xlu1 %657 }
 0x1a7   : > { %v754_v32 = vsub.f32 0.0, %v735_v37  ;;  %v757_v16 = vsub.f32 0.0, %v743_v40  ;;  %v1011_v25 = vsel %vm1596_vm1, %v1568_v58, %v1586_v4  ;;  %v1014_v23 = vsel %vm1618_vm4, %v1568_v58, %v1586_v4 }
 0x1a8   : > { %1103 = vst [vmem:[%s1876_s25] sm:$0xff] %v1071_v6  ;;  %1106 = vst [vmem:[%s1876_s25 + $0x18] sm:$0xff] %v1074_v7 }
 0x1a9   : > { %v883_v29 = vsel %vm1596_vm1, %v754_v32, %v872_v0  ;;  %v886_v35 = vsel %vm1618_vm4, %v757_v16, %v848_v59  ;;  %v690_v30 = vpop.permute.xlu0 %689 }
 0x1aa   : > { %v1043_v33 = vadd.f32 %v883_v29, %v1690_v41  ;;  %v1046_v63 = vadd.f32 %v886_v35, %v1696_v44  ;;  %v660_v36 = vpop.permute.xlu1 %659  ;;  %v2284_v35 = vsel %vm1610_vm2, %v1572_v60, %v1594_v10 }
 0x1ac   : > { %v1075_v9 = vadd.f32 %v1043_v33, %v1011_v25  ;;  %v1078_v12 = vadd.f32 %v1046_v63, %v1014_v23 }
 0x1ad   : > { %v787_v13 = vpop.permute.xlu0 %786 }
 0x1ae   : > { %1107 = vst [vmem:[%s1876_s25 + $0x20] sm:$0xff] %v1075_v9  ;;  %1110 = vst [vmem:[%s1876_s25 + $0x38] sm:$0xff] %v1078_v12  ;;  %v692_v39 = vpop.permute.xlu1 %691 }
 0x1b1   : > { %v819_v41 = vpop.permute.xlu0 %818 }
 0x1b2   : > { %v789_v38 = vpop.permute.xlu1 %788 }
 0x1b5   : > { %v674_v44 = vpop.permute.xlu0 %673 }
 0x1b6   : > { %v821_v2 = vpop.permute.xlu1 %820  ;;  %v728_v31 = vsel %vm717_vm5, %v674_v44, %v690_v30  ;;  %v736_v58 = vsel %vm717_vm5, %v658_v34, %v674_v44 }
 0x1b7   : > { %v759_v4 = vsub.f32 0.0, %v728_v31  ;;  %v758_v7 = vsub.f32 0.0, %v736_v58 }
 0x1b9   : > { %v706_v11 = vpop.permute.xlu0 %705 }
 0x1ba   : > { %v720_v26 = vsel %vm717_vm5, %v690_v30, %v706_v11  ;;  %v676_v1 = vpop.permute.xlu1 %675  ;;  %v744_v21 = vsel %vm717_vm5, %v706_v11, %v658_v34 }
 0x1bb   : > { %v760_v28 = vsub.f32 0.0, %v720_v26  ;;  %v729_v42 = vsel %vm717_vm5, %v676_v1, %v692_v39  ;;  %v761_v37 = vsub.f32 0.0, %v744_v21  ;;  %v737_v32 = vsel %vm717_vm5, %v660_v36, %v676_v1 }
 0x1bc   : > { %v763_v16 = vsub.f32 0.0, %v729_v42  ;;  %v762_v1 = vsub.f32 0.0, %v737_v32 }
 0x1bd   : > { %v803_v8 = vpop.permute.xlu0 %802 }
 0x1be   : > { %v857_v43 = vsel %vm846_vm6, %v803_v8, %v819_v41  ;;  %v865_v24 = vsel %vm846_vm6, %v787_v13, %v803_v8  ;;  %v708_v22 = vpop.permute.xlu1 %707  ;;  %v2289_v8 = vsel %vm1614_vm3, %v1574_v61, %v1600_v15 }
 0x1bf   : > { %v888_v57 = vsel %vm1610_vm2, %v759_v4, %v865_v24  ;;  %v889_v3 = vsel %vm1614_vm3, %v760_v28, %v857_v43  ;;  %v721_v6 = vsel %vm717_vm5, %v692_v39, %v708_v22  ;;  %v745_v59 = vsel %vm717_vm5, %v708_v22, %v660_v36 }
 0x1c0   : > { %v1048_v40 = vadd.f32 %v888_v57, %v1702_v47  ;;  %v1049_v34 = vadd.f32 %v889_v3, %v1700_v46  ;;  %v764_v0 = vsub.f32 0.0, %v721_v6  ;;  %v2285_v46 = vsel %vm1614_vm3, %v1572_v60, %v1594_v10 }
 0x1c1   : > { %v835_v29 = vpop.permute.xlu0 %834  ;;  %v765_v58 = vsub.f32 0.0, %v745_v59  ;;  %v2287_v4 = vsel %vm1618_vm4, %v1572_v60, %v1594_v10 }
 0x1c2   : > { %v1080_v30 = vadd.f32 %v1048_v40, %v2284_v35  ;;  %v1081_v47 = vadd.f32 %v1049_v34, %v2285_v46  ;;  %v849_v33 = vsel %vm846_vm6, %v819_v41, %v835_v29  ;;  %v873_v63 = vsel %vm846_vm6, %v835_v29, %v787_v13  ;;  %v805_v36 = vpop.permute.xlu1 %804 }
 0x1c3   : > { %v887_v25 = vsel %vm1596_vm1, %v758_v7, %v873_v63  ;;  %v890_v23 = vsel %vm1618_vm4, %v761_v37, %v849_v33  ;;  %v858_v9 = vsel %vm846_vm6, %v805_v36, %v821_v2  ;;  %v866_v12 = vsel %vm846_vm6, %v789_v38, %v805_v36 }
 0x1c4   : > { %1112 = vst [vmem:[%s1876_s25 + $0x48] sm:$0xff] %v1080_v30  ;;  %1113 = vst [vmem:[%s1876_s25 + $0x50] sm:$0xff] %v1081_v47  ;;  %v1047_v39 = vadd.f32 %v887_v25, %v1698_v45  ;;  %v1050_v13 = vadd.f32 %v890_v23, %v1704_v48  ;;  %v892_v41 = vsel %vm1610_vm2, %v763_v16, %v866_v12 }
 0x1c5   : > { %v893_v44 = vsel %vm1614_vm3, %v764_v0, %v858_v9  ;;  %v1052_v11 = vadd.f32 %v892_v41, %v1710_v51  ;;  %v662_v26 = vpop.permute.xlu0 %661  ;;  %v2286_v45 = vsel %vm1596_vm1, %v1572_v60, %v1594_v10  ;;  %v2291_v7 = vsel %vm1618_vm4, %v1574_v61, %v1600_v15 }
 0x1c6   : > { %v1053_v31 = vadd.f32 %v893_v44, %v1708_v50  ;;  %v1079_v48 = vadd.f32 %v1047_v39, %v2286_v45  ;;  %v1082_v21 = vadd.f32 %v1050_v13, %v2287_v4  ;;  %v837_v51 = vpop.permute.xlu1 %836  ;;  %v2288_v50 = vsel %vm1610_vm2, %v1574_v61, %v1600_v15 }
 0x1c7   : > { %v1084_v28 = vadd.f32 %v1052_v11, %v2288_v50  ;;  %v850_v43 = vsel %vm846_vm6, %v821_v2, %v837_v51  ;;  %v874_v60 = vsel %vm846_vm6, %v837_v51, %v789_v38  ;;  %v2290_v38 = vsel %vm1596_vm1, %v1574_v61, %v1600_v15 }
 0x1c8   : > { %v1085_v42 = vadd.f32 %v1053_v31, %v2289_v8  ;;  %1111 = vst [vmem:[%s1876_s25 + $0x40] sm:$0xff] %v1079_v48  ;;  %1114 = vst [vmem:[%s1876_s25 + $0x58] sm:$0xff] %v1082_v21  ;;  %v891_v10 = vsel %vm1596_vm1, %v762_v1, %v874_v60  ;;  %v894_v24 = vsel %vm1618_vm4, %v765_v58, %v850_v43 }
 0x1c9   : > { %1116 = vst [vmem:[%s1876_s25 + $0x68] sm:$0xff] %v1084_v28  ;;  %v1051_v22 = vadd.f32 %v891_v10, %v1706_v49  ;;  %v1054_v57 = vadd.f32 %v894_v24, %v1712_v52  ;;  %v694_v3 = vpop.permute.xlu0 %693  ;;  %v2292_v45 = vsel %vm1610_vm2, %v1576_v62, %v1646_v27 }
 0x1ca   : > { %1117 = vst [vmem:[%s1876_s25 + $0x70] sm:$0xff] %v1085_v42  ;;  %v664_v6 = vpop.permute.xlu1 %663 }
 0x1cb   : > { %v1083_v2 = vadd.f32 %v1051_v22, %v2290_v38  ;;  %v1086_v37 = vadd.f32 %v1054_v57, %v2291_v7  ;;  %v2294_v22 = vld [vmem:[#allocation8_spill] sm:$0xff] }
 0x1cd   : > { %1115 = vst [vmem:[%s1876_s25 + $0x60] sm:$0xff] %v1083_v2  ;;  %1118 = vst [vmem:[%s1876_s25 + $0x78] sm:$0xff] %v1086_v37  ;;  %v791_v40 = vpop.permute.xlu0 %790  ;;  %v2297_v37 = vsel %vm1618_vm4, %v1576_v62, %v1646_v27 }
 0x1ce   : > { %v696_v49 = vpop.permute.xlu1 %695 }
 0x1d1   : > { %v823_v34 = vpop.permute.xlu0 %822 }
 0x1d2   : > { %v793_v52 = vpop.permute.xlu1 %792 }
 0x1d5   : > { %v678_v32 = vpop.permute.xlu0 %677 }
 0x1d6   : > { %v825_v16 = vpop.permute.xlu1 %824  ;;  %v730_v0 = vsel %vm717_vm5, %v678_v32, %v694_v3  ;;  %v738_v61 = vsel %vm717_vm5, %v662_v26, %v678_v32  ;;  %v2299_v32 = vld [vmem:[#allocation5_spill] sm:$0xff] }
 0x1d7   : > { %v767_v15 = vsub.f32 0.0, %v730_v0  ;;  %v766_v39 = vsub.f32 0.0, %v738_v61 }
 0x1d9   : > { %v710_v59 = vpop.permute.xlu0 %709 }
 0x1da   : > { %v722_v29 = vsel %vm717_vm5, %v694_v3, %v710_v59  ;;  %v680_v35 = vpop.permute.xlu1 %679  ;;  %v746_v30 = vsel %vm717_vm5, %v710_v59, %v662_v26  ;;  %v2295_v3 = vld [vmem:[#allocation7_spill] sm:$0xff] }
 0x1db   : > { %v768_v46 = vsub.f32 0.0, %v722_v29  ;;  %v731_v33 = vsel %vm717_vm5, %v680_v35, %v696_v49  ;;  %v769_v13 = vsub.f32 0.0, %v746_v30  ;;  %v739_v11 = vsel %vm717_vm5, %v664_v6, %v680_v35  ;;  %v2302_v30 = vld [vmem:[#allocation6_spill] sm:$0xff] }
 0x1dc   : > { %v771_v31 = vsub.f32 0.0, %v731_v33  ;;  %v770_v2 = vsub.f32 0.0, %v739_v11 }
 0x1dd   : > { %v807_v47 = vpop.permute.xlu0 %806 }
 0x1de   : > { %v859_v63 = vsel %vm846_vm6, %v807_v47, %v823_v34  ;;  %v867_v36 = vsel %vm846_vm6, %v791_v40, %v807_v47  ;;  %v712_v25 = vpop.permute.xlu1 %711  ;;  %v2303_v47 = vld [vmem:[#allocation9_spill] sm:$0xff] }
 0x1df   : > { %v896_v23 = vsel %vm1610_vm2, %v767_v15, %v867_v36  ;;  %v897_v9 = vsel %vm1614_vm3, %v768_v46, %v859_v63  ;;  %v723_v12 = vsel %vm717_vm5, %v696_v49, %v712_v25  ;;  %v747_v26 = vsel %vm717_vm5, %v712_v25, %v664_v6 }
 0x1e0   : > { %v1056_v41 = vadd.f32 %v896_v23, %v1718_v55  ;;  %v1057_v44 = vadd.f32 %v897_v9, %v1716_v54  ;;  %v772_v1 = vsub.f32 0.0, %v723_v12  ;;  %v2293_v54 = vsel %vm1614_vm3, %v1576_v62, %v1646_v27 }
 0x1e1   : > { %v839_v58 = vpop.permute.xlu0 %838  ;;  %v773_v7 = vsub.f32 0.0, %v747_v26 }
 0x1e2   : > { %v1088_v48 = vadd.f32 %v1056_v41, %v2292_v45  ;;  %v1089_v55 = vadd.f32 %v1057_v44, %v2293_v54  ;;  %v851_v4 = vsel %vm846_vm6, %v823_v34, %v839_v58  ;;  %v875_v21 = vsel %vm846_vm6, %v839_v58, %v791_v40  ;;  %v809_v51 = vpop.permute.xlu1 %808  ;;  %v2298_v34 = vld [vmem:[#allocation2_spill] sm:$0xff]  ;;  %v2306_v58 = vld [vmem:[#allocation3_spill] sm:$0xff] }
 0x1e3   : > { %v895_v50 = vsel %vm1596_vm1, %v766_v39, %v875_v21  ;;  %v898_v28 = vsel %vm1618_vm4, %v769_v13, %v851_v4  ;;  %v860_v8 = vsel %vm846_vm6, %v809_v51, %v825_v16  ;;  %v868_v42 = vsel %vm846_vm6, %v793_v52, %v809_v51  ;;  %v2307_v54 = vld [vmem:[#allocation18_spill] sm:$0xff] }
 0x1e4   : > { %1120 = vst [vmem:[%s1876_s25 + $0x88] sm:$0xff] %v1088_v48  ;;  %1121 = vst [vmem:[%s1876_s25 + $0x90] sm:$0xff] %v1089_v55  ;;  %v1055_v43 = vadd.f32 %v895_v50, %v1714_v53  ;;  %v1058_v60 = vadd.f32 %v898_v28, %v1720_v56  ;;  %v900_v10 = vsel %vm1610_vm2, %v771_v31, %v868_v42  ;;  %v2308_v55 = vld [vmem:[#allocation4_spill] sm:$0xff] }
 0x1e5   : > { %v901_v24 = vsel %vm1614_vm3, %v772_v1, %v860_v8  ;;  %v1060_v57 = vadd.f32 %v900_v10, %v2294_v22  ;;  %v666_v38 = vpop.permute.xlu0 %665  ;;  %v2296_v53 = vsel %vm1596_vm1, %v1576_v62, %v1646_v27  ;;  %v2300_v59 = vsel %vm1610_vm2, %v2298_v34, %v2299_v32 }
 0x1e6   : > { %v1061_v6 = vadd.f32 %v901_v24, %v2295_v3  ;;  %v1087_v56 = vadd.f32 %v1055_v43, %v2296_v53  ;;  %v1090_v40 = vadd.f32 %v1058_v60, %v2297_v37  ;;  %v841_v49 = vpop.permute.xlu1 %840  ;;  %v2301_v29 = vsel %vm1614_vm3, %v2298_v34, %v2299_v32 }
 0x1e7   : > { %v1092_v0 = vadd.f32 %v1060_v57, %v2300_v59  ;;  %v852_v61 = vsel %vm846_vm6, %v825_v16, %v841_v49  ;;  %v876_v62 = vsel %vm846_vm6, %v841_v49, %v793_v52  ;;  %v2304_v52 = vsel %vm1596_vm1, %v2298_v34, %v2299_v32 }
 0x1e8   : > { %v1093_v35 = vadd.f32 %v1061_v6, %v2301_v29  ;;  %1119 = vst [vmem:[%s1876_s25 + $0x80] sm:$0xff] %v1087_v56  ;;  %1122 = vst [vmem:[%s1876_s25 + $0x98] sm:$0xff] %v1090_v40  ;;  %v899_v27 = vsel %vm1596_vm1, %v770_v2, %v876_v62  ;;  %v902_v15 = vsel %vm1618_vm4, %v773_v7, %v852_v61  ;;  %v2309_v7 = vld [vmem:[#allocation12_spill] sm:$0xff]  ;;  %v2310_v56 = vld [vmem:[#allocation11_spill] sm:$0xff] }
 0x1e9   : > { %1124 = vst [vmem:[%s1876_s25 + $0xa8] sm:$0xff] %v1092_v0  ;;  %v1059_v46 = vadd.f32 %v899_v27, %v2302_v30  ;;  %v1062_v33 = vadd.f32 %v902_v15, %v2303_v47  ;;  %v698_v63 = vpop.permute.xlu0 %697  ;;  %v2305_v25 = vsel %vm1618_vm4, %v2298_v34, %v2299_v32  ;;  %v1032_v45 = vsel %vm1610_vm2, %v2306_v58, %v1807_v17 }
 0x1ea   : > { %1125 = vst [vmem:[%s1876_s25 + $0xb0] sm:$0xff] %v1093_v35  ;;  %v668_v36 = vpop.permute.xlu1 %667  ;;  %v1033_v48 = vsel %vm1614_vm3, %v2306_v58, %v1807_v17  ;;  %v1035_v4 = vsel %vm1596_vm1, %v2308_v55, %v2307_v54  ;;  %v1036_v21 = vsel %vm1610_vm2, %v2308_v55, %v2307_v54  ;;  %v1031_v5 = vsel %vm1596_vm1, %v2306_v58, %v1807_v17 }
 0x1eb   : > { %v1091_v16 = vadd.f32 %v1059_v46, %v2304_v52  ;;  %v1094_v23 = vadd.f32 %v1062_v33, %v2305_v25  ;;  %v2311_v46 = vld [vmem:[#allocation14_spill] sm:$0xff]  ;;  %v2312_v33 = vld [vmem:[#allocation17_spill] sm:$0xff]  ;;  %v1038_v25 = vsel %vm1618_vm4, %v2308_v55, %v2307_v54 }
 0x1ed   : > { %1123 = vst [vmem:[%s1876_s25 + $0xa0] sm:$0xff] %v1091_v16  ;;  %1126 = vst [vmem:[%s1876_s25 + $0xb8] sm:$0xff] %v1094_v23  ;;  %v2138_v9 = vpop.permute.xlu0 %794  ;;  %v1037_v16 = vsel %vm1614_vm3, %v2308_v55, %v2307_v54  ;;  %v2313_v23 = vld [vmem:[#allocation16_spill] sm:$0xff] }
 0x1ee   : > { %v700_v12 = vpop.permute.xlu1 %699 }
 0x1f1   : > { %v827_v39 = vpop.permute.xlu0 %826 }
 0x1f2   : > { %v797_v13 = vpop.permute.xlu1 %796 }
 0x1f5   : > { %v682_v41 = vpop.permute.xlu0 %681 }
 0x1f6   : > { %v829_v44 = vpop.permute.xlu1 %828  ;;  %v732_v31 = vsel %vm717_vm5, %v682_v41, %v698_v63  ;;  %v740_v6 = vsel %vm717_vm5, %v666_v38, %v682_v41 }
 0x1f7   : > { %v775_v51 = vsub.f32 0.0, %v732_v31  ;;  %v774_v41 = vsub.f32 0.0, %v740_v6 }
 0x1f9   : > { %v714_v11 = vpop.permute.xlu0 %713 }
 0x1fa   : > { %v724_v26 = vsel %vm717_vm5, %v698_v63, %v714_v11  ;;  %v684_v1 = vpop.permute.xlu1 %683  ;;  %v748_v2 = vsel %vm717_vm5, %v714_v11, %v666_v38 }
 0x1fb   : > { %v776_v50 = vsub.f32 0.0, %v724_v26  ;;  %v733_v8 = vsel %vm717_vm5, %v684_v1, %v700_v12  ;;  %v741_v42 = vsel %vm717_vm5, %v668_v36, %v684_v1 }
 0x1fc   : > { %v778_v40 = vsub.f32 0.0, %v741_v42  ;;  %v779_v49 = vsub.f32 0.0, %v733_v8 }
 0x1fd   : > { %v811_v28 = vpop.permute.xlu0 %810 }
 0x1fe   : > { %v861_v43 = vsel %vm846_vm6, %v811_v28, %v827_v39  ;;  %v869_v60 = vsel %vm846_vm6, %v2138_v9, %v811_v28  ;;  %v716_v10 = vpop.permute.xlu1 %715 }
 0x1ff   : > { %v904_v24 = vsel %vm1610_vm2, %v775_v51, %v869_v60  ;;  %v905_v22 = vsel %vm1614_vm3, %v776_v50, %v861_v43  ;;  %v725_v57 = vsel %vm717_vm5, %v700_v12, %v716_v10  ;;  %v749_v3 = vsel %vm717_vm5, %v716_v10, %v668_v36  ;;  %v2316_v51 = vld [vmem:[#allocation13_spill] sm:$0xff] }
 0x200   : > { %v1064_v53 = vadd.f32 %v904_v24, %v2309_v7  ;;  %v1065_v37 = vadd.f32 %v905_v22, %v2310_v56  ;;  %v780_v34 = vsub.f32 0.0, %v725_v57  ;;  %v781_v32 = vsub.f32 0.0, %v749_v3 }
 0x201   : > { %v845_v59 = vpop.permute.xlu0 %844 }
 0x202   : > { %v1096_v0 = vadd.f32 %v1064_v53, %v1032_v45  ;;  %v1097_v29 = vadd.f32 %v1065_v37, %v1033_v48  ;;  %v854_v35 = vsel %vm846_vm6, %v829_v44, %v845_v59  ;;  %v878_v61 = vsel %vm846_vm6, %v845_v59, %v797_v13  ;;  %v813_v38 = vpop.permute.xlu1 %812 }
 0x203   : > { %v907_v62 = vsel %vm1596_vm1, %v778_v40, %v878_v61  ;;  %v910_v27 = vsel %vm1618_vm4, %v781_v32, %v854_v35  ;;  %v862_v15 = vsel %vm846_vm6, %v813_v38, %v829_v44  ;;  %v870_v30 = vsel %vm846_vm6, %v797_v13, %v813_v38 }
 0x204   : > { %1128 = vst [vmem:[%s1876_s25 + $0xc8] sm:$0xff] %v1096_v0  ;;  %1129 = vst [vmem:[%s1876_s25 + $0xd0] sm:$0xff] %v1097_v29  ;;  %v1067_v47 = vadd.f32 %v907_v62, %v2311_v46  ;;  %v1070_v63 = vadd.f32 %v910_v27, %v2312_v33  ;;  %v908_v36 = vsel %vm1610_vm2, %v779_v49, %v870_v30  ;;  %v777_v44 = vsub.f32 0.0, %v748_v2 }
 0x205   : > { %v909_v52 = vsel %vm1614_vm3, %v780_v34, %v862_v15  ;;  %v1068_v12 = vadd.f32 %v908_v36, %v2313_v23 }
 0x206   : > { %v1069_v13 = vadd.f32 %v909_v52, %v2314_v18  ;;  %v1099_v11 = vadd.f32 %v1067_v47, %v1035_v4  ;;  %v1102_v31 = vadd.f32 %v1070_v63, %v1038_v25  ;;  %v843_v26 = vpop.permute.xlu1 %842  ;;  %v2315_v4 = vld [vmem:[#allocation10_spill] sm:$0xff] }
 0x207   : > { %v1100_v1 = vadd.f32 %v1068_v12, %v1036_v21  ;;  %v853_v45 = vsel %vm846_vm6, %v827_v39, %v843_v26  ;;  %v877_v48 = vsel %vm846_vm6, %v843_v26, %v2138_v9  ;;  %v1034_v9 = vsel %vm1618_vm4, %v2306_v58, %v1807_v17 }
 0x208   : > { %v1101_v19 = vadd.f32 %v1069_v13, %v1037_v16  ;;  %1131 = vst [vmem:[%s1876_s25 + $0xe0] sm:$0xff] %v1099_v11  ;;  %1134 = vst [vmem:[%s1876_s25 + $0xf8] sm:$0xff] %v1102_v31  ;;  %v903_v54 = vsel %vm1596_vm1, %v774_v41, %v877_v48  ;;  %v906_v55 = vsel %vm1618_vm4, %v777_v44, %v853_v45 }
 0x209   : > { %1132 = vst [vmem:[%s1876_s25 + $0xe8] sm:$0xff] %v1100_v1  ;;  %v1063_v21 = vadd.f32 %v903_v54, %v2315_v4  ;;  %v1066_v50 = vadd.f32 %v906_v55, %v2316_v51 }
 0x20a   : > { %1133 = vst [vmem:[%s1876_s25 + $0xf0] sm:$0xff] %v1101_v19 }
 0x20b   : > { %v1095_v39 = vadd.f32 %v1063_v21, %v1031_v5  ;;  %v1098_v28 = vadd.f32 %v1066_v50, %v1034_v9 }
 0x20d   : > { %1127 = vst [vmem:[%s1876_s25 + $0xc0] sm:$0xff] %v1095_v39  ;;  %1130 = vst [vmem:[%s1876_s25 + $0xd8] sm:$0xff] %v1098_v28 }
 0x20e PF: > { %s14_s17 = sadd.s32 1, %s1335_s17   ;;  %s2317_s15 = smov %s1331_s16 }
 0x20f   : > { %p11_p5 = scmp.ge.s32.totalorder %s14_s17, 4   ;;  %s2318_s16 = smov %s2320_s18 }
 0x211   :  { %13 = sbr.rel (!%p11_p5) target bundleno = 2 (0x2), region = 66 }

</bundles_post_ra>
